<compile_context>
chip_gen: v6e
topology: v6e:2x2x1
jax: 0.10.0
libtpu: 0.0.40
codegen_flags: <defaults>
</compile_context>

<pallas_src>
import jax
import jax.numpy as jnp
from jax.experimental import pallas as pl
from jax.experimental.pallas import tpu as pltpu


# ----------------------------- configuration -------------------------------
BATCH       = 8      # batch_size (demo)
DIMENSIONS  = 16     # config.data0.dimensions
VOCAB_SIZE  = 2      # config.data0.vocab_size (repeat factor in forward)
TIME_EMB    = 32     # sinusoidal time-embedding width
HIDDEN      = 64     # temporal net hidden width
TEMP_OUT    = 32     # temporal net expected_output_shape = [TEMP_OUT] != [DIMENSIONS]

MAX_BLOCK_B = 128    # batch-tile rows when B is large (fills MXU M dimension)


# ------------------------------ Pallas kernel ------------------------------
def dsb_rate_kernel(x_ref, t_ref, freqs_ref,
                    w1_ref, wts_ref, wtc_ref, b_in_ref,
                    w_out_ref, b_out_ref, out_ref):
    x = x_ref[...]                                        # [bB, D]

    # sinusoidal time embedding, computed in-kernel (EUP sin/cos, VPU mul).
    args = t_ref[...] * freqs_ref[...]                    # [bB, half]
    s = jnp.sin(args)
    c = jnp.cos(args)

    # fused temporal-net hidden layer:
    #   relu(x @ W1 + sin(args) @ Wt_sin + cos(args) @ Wt_cos + (b1 + bt))
    h = (jnp.dot(x, w1_ref[...], preferred_element_type=jnp.float32)
         + jnp.dot(s, wts_ref[...], preferred_element_type=jnp.float32)
         + jnp.dot(c, wtc_ref[...], preferred_element_type=jnp.float32)
         + b_in_ref[...])
    h = jnp.maximum(h, 0.0)                               # [bB, H]  (f32 VPU)

    # fused (temporal output ∘ temporal_to_rate): h @ (W2 @ Wr) + (b2 @ Wr + br)
    logits = jnp.dot(h, w_out_ref[...], preferred_element_type=jnp.float32) + b_out_ref[...]

    # softplus, numerically stable: log1p(exp(-|x|)) + max(x, 0)   (f32 EUP/VPU)
    rate = jnp.log1p(jnp.exp(-jnp.abs(logits))) + jnp.maximum(logits, 0.0)   # [bB, D]

    # lane-dense [bB, D] store; vocab repeat happens in the wrapper.
    out_ref[...] = rate.astype(out_ref.dtype)


def schrodinger_bridge_rate(x, time, fused_params):
    """x: [B, D] float32, time: [B] float32 -> [B, D, VOCAB_SIZE] float32."""
    B, D = x.shape
    t2d = time.astype(jnp.float32)[:, None]                       # [B, 1]

    freqs = fused_params["freqs"]                                 # [1, half]
    w1, wts, wtc = fused_params["w1"], fused_params["wt_sin"], fused_params["wt_cos"]
    b_in = fused_params["b_in"]                                   # [1, H]
    w_out, b_out = fused_params["w_out"], fused_params["b_out"]   # [H, D], [1, D]
    half = freqs.shape[1]
    H = w1.shape[1]

    # Batch-tiled grid; weights stay fully VMEM-resident across all tiles.
    block_b = B if B < MAX_BLOCK_B else MAX_BLOCK_B
    grid = (pl.cdiv(B, block_b),)

    rate = pl.pallas_call(
        dsb_rate_kernel,
        out_shape=jax.ShapeDtypeStruct((B, D), jnp.float32),
        grid=grid,
        in_specs=[
            pl.BlockSpec((block_b, D),  lambda i: (i, 0)),   # x: tiled over batch
            pl.BlockSpec((block_b, 1),  lambda i: (i, 0)),   # time column: tiled
            pl.BlockSpec((1, half),     lambda i: (0, 0)),   # freqs: resident
            pl.BlockSpec((D, H),        lambda i: (0, 0)),   # W1: resident
            pl.BlockSpec((half, H),     lambda i: (0, 0)),   # Wt_sin: resident
            pl.BlockSpec((half, H),     lambda i: (0, 0)),   # Wt_cos: resident
            pl.BlockSpec((1, H),        lambda i: (0, 0)),   # b_in: resident
            pl.BlockSpec((H, D),        lambda i: (0, 0)),   # W_out: resident
            pl.BlockSpec((1, D),        lambda i: (0, 0)),   # b_out: resident
        ],
        out_specs=pl.BlockSpec((block_b, D), lambda i: (i, 0)),   # lane-dense [bB, D]
        compiler_params=pltpu.CompilerParams(
            dimension_semantics=("parallel",)),                   # 2 TCs on v7x
    )(x, t2d, freqs, w1, wts, wtc, b_in, w_out, b_out)

    # rate[:, :, None].repeat((1, 1, 2)) — free broadcast in the wrapper.
    return jnp.broadcast_to(rate[:, :, None], (B, D, VOCAB_SIZE))


# ------------------------------ JAX glue ----------------------------------
def sinusoidal_freqs(embed_dim):
    half = embed_dim // 2
    return jnp.exp(-jnp.log(10000.0)
                   * jnp.arange(half, dtype=jnp.float32) / (half - 1))[None, :]  # [1, half]


def sinusoidal_time_embedding(times, embed_dim):
    # transformer_timestep_embedding (standard sinusoidal, [sin, cos] order).
    # TODO(synk): verify denominator (half - 1) and [sin, cos] ordering against
    # the exact transformer_timestep_embedding used by the original repo.
    args = times.astype(jnp.float32)[:, None] * sinusoidal_freqs(embed_dim)
    return jnp.concatenate([jnp.sin(args), jnp.cos(args)], axis=-1)  # [B, E]


def init_params(key):
    """Raw (unfused) parameters, matching the PyTorch module layout."""
    ks = jax.random.split(key, 8)
    def lin(k, fan_in, shape):
        scale = 1.0 / jnp.sqrt(fan_in)
        return jax.random.uniform(k, shape, jnp.float32, -scale, scale)
    return {
        # temporal network
        "w1": lin(ks[0], DIMENSIONS, (DIMENSIONS, HIDDEN)),
        "b1": lin(ks[1], DIMENSIONS, (1, HIDDEN)),
        "wt": lin(ks[2], TIME_EMB,   (TIME_EMB, HIDDEN)),
        "bt": lin(ks[3], TIME_EMB,   (1, HIDDEN)),
        "w2": lin(ks[4], HIDDEN,     (HIDDEN, TEMP_OUT)),
        "b2": lin(ks[5], HIDDEN,     (1, TEMP_OUT)),
        # temporal_to_rate = nn.Linear(TEMP_OUT, DIMENSIONS)
        "wr": lin(ks[6], TEMP_OUT,   (TEMP_OUT, DIMENSIONS)),
        "br": lin(ks[7], TEMP_OUT,   (1, DIMENSIONS)),
    }


def fuse_params(p):
    """One-time algebraic fusion (done at init / load time, not per call)."""
    half = TIME_EMB // 2
    return {
        "freqs":  sinusoidal_freqs(TIME_EMB),                    # [1, half]
        "w1":     p["w1"],                                       # [D, H]
        "wt_sin": p["wt"][:half],                                # [half, H]
        "wt_cos": p["wt"][half:],                                # [half, H]
        "b_in":   p["b1"] + p["bt"],                             # [1, H]
        "w_out":  p["w2"] @ p["wr"],                             # [H, D]
        "b_out":  p["b2"] @ p["wr"] + p["br"],                   # [1, D]
    }


def reference_forward(x, time, params):
    """Unfused reference, mirroring the PyTorch forward exactly."""
    temb = sinusoidal_time_embedding(time, TIME_EMB)
    h = jnp.maximum(x @ params["w1"] + params["b1"]
                    + temb @ params["wt"] + params["bt"], 0.0)
    t_out = h @ params["w2"] + params["b2"]
    logits = t_out @ params["wr"] + params["br"]
    rate = jax.nn.softplus(logits)
    return jnp.broadcast_to(rate[:, :, None], (x.shape[0], DIMENSIONS, VOCAB_SIZE))


# ------------------------------ main ---------------------------------------
if __name__ == "__main__":
    key = jax.random.PRNGKey(0)
    kx, kt, kp = jax.random.split(key, 3)

    x = jax.random.normal(kx, (BATCH, DIMENSIONS), jnp.float32)   # [B, dimensions]
    time = jax.random.uniform(kt, (BATCH,), jnp.float32)          # [B]
    params = init_params(kp)
    fused = fuse_params(params)

    out = schrodinger_bridge_rate(x, time, fused)
    out = jax.block_until_ready(out)

    ref = reference_forward(x, time, params)
    assert out.shape == (BATCH, DIMENSIONS, VOCAB_SIZE)
    # Fused weights differ from the reference only by fp32 reassociation.
    assert jnp.allclose(out, ref, atol=1e-5, rtol=1e-5)

    print("KERNEL_OK")
</pallas_src>

<mosaic_0001>
module attributes {stable_mosaic.version = 11 : i64} {
  func.func @dsb_rate_kernel(%arg0: i32, %arg1: memref<8x16xf32, #tpu.memory_space<vmem>>, %arg2: memref<8x1xf32, #tpu.memory_space<vmem>>, %arg3: memref<1x16xf32, #tpu.memory_space<vmem>>, %arg4: memref<16x64xf32, #tpu.memory_space<vmem>>, %arg5: memref<16x64xf32, #tpu.memory_space<vmem>>, %arg6: memref<16x64xf32, #tpu.memory_space<vmem>>, %arg7: memref<1x64xf32, #tpu.memory_space<vmem>>, %arg8: memref<64x16xf32, #tpu.memory_space<vmem>>, %arg9: memref<1x16xf32, #tpu.memory_space<vmem>>, %arg10: memref<8x16xf32, #tpu.memory_space<vmem>>) attributes {dimension_semantics = [#tpu.dimension_semantics<parallel>], iteration_bounds = array<i64: 1>, scalar_prefetch = 0 : i64, scratch_operands = 0 : i64, tpu.core_type = #tpu.core_type<tc>, window_params = [{transform_indices = @transform_0, window_bounds = array<i64: 8, 16>}, {transform_indices = @transform_1, window_bounds = array<i64: 8, 1>}, {pipeline_mode = #tpu.pipeline_mode<synchronous>, transform_indices = @transform_2, window_bounds = array<i64: 1, 16>}, {pipeline_mode = #tpu.pipeline_mode<synchronous>, transform_indices = @transform_3, window_bounds = array<i64: 16, 64>}, {pipeline_mode = #tpu.pipeline_mode<synchronous>, transform_indices = @transform_4, window_bounds = array<i64: 16, 64>}, {pipeline_mode = #tpu.pipeline_mode<synchronous>, transform_indices = @transform_5, window_bounds = array<i64: 16, 64>}, {pipeline_mode = #tpu.pipeline_mode<synchronous>, transform_indices = @transform_6, window_bounds = array<i64: 1, 64>}, {pipeline_mode = #tpu.pipeline_mode<synchronous>, transform_indices = @transform_7, window_bounds = array<i64: 64, 16>}, {pipeline_mode = #tpu.pipeline_mode<synchronous>, transform_indices = @transform_8, window_bounds = array<i64: 1, 16>}, {transform_indices = @transform_9, window_bounds = array<i64: 8, 16>}]} {
    %c0 = arith.constant 0 : index
    %c0_0 = arith.constant 0 : index
    %0 = vector.load %arg1[%c0, %c0_0] : memref<8x16xf32, #tpu.memory_space<vmem>>, vector<8x16xf32>
    %c0_1 = arith.constant 0 : index
    %c0_2 = arith.constant 0 : index
    %1 = vector.load %arg2[%c0_1, %c0_2] : memref<8x1xf32, #tpu.memory_space<vmem>>, vector<8x1xf32>
    %c0_3 = arith.constant 0 : index
    %c0_4 = arith.constant 0 : index
    %2 = vector.load %arg3[%c0_3, %c0_4] : memref<1x16xf32, #tpu.memory_space<vmem>>, vector<1x16xf32>
    %3 = vector.broadcast %1 : vector<8x1xf32> to vector<8x16xf32>
    %4 = vector.broadcast %2 : vector<1x16xf32> to vector<8x16xf32>
    %5 = arith.mulf %3, %4 : vector<8x16xf32>
    %6 = math.sin %5 : vector<8x16xf32>
    %7 = math.cos %5 : vector<8x16xf32>
    %c0_5 = arith.constant 0 : index
    %c0_6 = arith.constant 0 : index
    %8 = vector.load %arg4[%c0_5, %c0_6] : memref<16x64xf32, #tpu.memory_space<vmem>>, vector<16x64xf32>
    %cst = arith.constant dense<0.000000e+00> : vector<8x64xf32>
    %9 = tpu.matmul %0, %8, %cst {dimension_numbers = #tpu.dot_dimension_numbers<[1], [0], [0], [1], [0, 0, 1, 1], [], []>} : vector<8x16xf32>, vector<16x64xf32>, vector<8x64xf32> -> vector<8x64xf32>
    %c0_7 = arith.constant 0 : index
    %c0_8 = arith.constant 0 : index
    %10 = vector.load %arg5[%c0_7, %c0_8] : memref<16x64xf32, #tpu.memory_space<vmem>>, vector<16x64xf32>
    %cst_9 = arith.constant dense<0.000000e+00> : vector<8x64xf32>
    %11 = tpu.matmul %6, %10, %cst_9 {dimension_numbers = #tpu.dot_dimension_numbers<[1], [0], [0], [1], [0, 0, 1, 1], [], []>} : vector<8x16xf32>, vector<16x64xf32>, vector<8x64xf32> -> vector<8x64xf32>
    %12 = arith.addf %9, %11 : vector<8x64xf32>
    %c0_10 = arith.constant 0 : index
    %c0_11 = arith.constant 0 : index
    %13 = vector.load %arg6[%c0_10, %c0_11] : memref<16x64xf32, #tpu.memory_space<vmem>>, vector<16x64xf32>
    %cst_12 = arith.constant dense<0.000000e+00> : vector<8x64xf32>
    %14 = tpu.matmul %7, %13, %cst_12 {dimension_numbers = #tpu.dot_dimension_numbers<[1], [0], [0], [1], [0, 0, 1, 1], [], []>} : vector<8x16xf32>, vector<16x64xf32>, vector<8x64xf32> -> vector<8x64xf32>
    %15 = arith.addf %12, %14 : vector<8x64xf32>
    %c0_13 = arith.constant 0 : index
    %c0_14 = arith.constant 0 : index
    %16 = vector.load %arg7[%c0_13, %c0_14] : memref<1x64xf32, #tpu.memory_space<vmem>>, vector<1x64xf32>
    %17 = vector.broadcast %16 : vector<1x64xf32> to vector<8x64xf32>
    %18 = arith.addf %15, %17 : vector<8x64xf32>
    %cst_15 = arith.constant 0.000000e+00 : f32
    %19 = vector.broadcast %cst_15 : f32 to vector<8x64xf32>
    %20 = arith.maximumf %18, %19 : vector<8x64xf32>
    %c0_16 = arith.constant 0 : index
    %c0_17 = arith.constant 0 : index
    %21 = vector.load %arg8[%c0_16, %c0_17] : memref<64x16xf32, #tpu.memory_space<vmem>>, vector<64x16xf32>
    %cst_18 = arith.constant dense<0.000000e+00> : vector<8x16xf32>
    %22 = tpu.matmul %20, %21, %cst_18 {dimension_numbers = #tpu.dot_dimension_numbers<[1], [0], [0], [1], [0, 0, 1, 1], [], []>} : vector<8x64xf32>, vector<64x16xf32>, vector<8x16xf32> -> vector<8x16xf32>
    %c0_19 = arith.constant 0 : index
    %c0_20 = arith.constant 0 : index
    %23 = vector.load %arg9[%c0_19, %c0_20] : memref<1x16xf32, #tpu.memory_space<vmem>>, vector<1x16xf32>
    %24 = vector.broadcast %23 : vector<1x16xf32> to vector<8x16xf32>
    %25 = arith.addf %22, %24 : vector<8x16xf32>
    %26 = math.absf %25 : vector<8x16xf32>
    %cst_21 = arith.constant 0.000000e+00 : f32
    %27 = vector.broadcast %cst_21 : f32 to vector<8x16xf32>
    %28 = arith.subf %27, %26 : vector<8x16xf32>
    %29 = math.exp %28 : vector<8x16xf32>
    %30 = math.log1p %29 : vector<8x16xf32>
    %cst_22 = arith.constant 0.000000e+00 : f32
    %31 = vector.broadcast %cst_22 : f32 to vector<8x16xf32>
    %32 = arith.maximumf %25, %31 : vector<8x16xf32>
    %33 = arith.addf %30, %32 : vector<8x16xf32>
    %c0_23 = arith.constant 0 : index
    %c0_24 = arith.constant 0 : index
    %34 = vector.load %arg10[%c0_23, %c0_24] : memref<8x16xf32, #tpu.memory_space<vmem>>, vector<8x16xf32>
    tpu.vector_store %arg10[%c0_23, %c0_24], %33 {strides = array<i32>} : memref<8x16xf32, #tpu.memory_space<vmem>>, vector<8x16xf32>,
    return
  }
  func.func @transform_0(%arg0: i32) -> (i32, i32) {
    %c0_i32 = arith.constant 0 : i32
    %c0_i32_0 = arith.constant 0 : i32
    return %arg0, %c0_i32 : i32, i32
  }
  func.func @transform_1(%arg0: i32) -> (i32, i32) {
    %c0_i32 = arith.constant 0 : i32
    %c0_i32_0 = arith.constant 0 : i32
    return %arg0, %c0_i32 : i32, i32
  }
  func.func @transform_2(%arg0: i32) -> (i32, i32) {
    %c0_i32 = arith.constant 0 : i32
    %c0_i32_0 = arith.constant 0 : i32
    %c0_i32_1 = arith.constant 0 : i32
    return %c0_i32, %c0_i32_0 : i32, i32
  }
  func.func @transform_3(%arg0: i32) -> (i32, i32) {
    %c0_i32 = arith.constant 0 : i32
    %c0_i32_0 = arith.constant 0 : i32
    %c0_i32_1 = arith.constant 0 : i32
    return %c0_i32, %c0_i32_0 : i32, i32
  }
  func.func @transform_4(%arg0: i32) -> (i32, i32) {
    %c0_i32 = arith.constant 0 : i32
    %c0_i32_0 = arith.constant 0 : i32
    %c0_i32_1 = arith.constant 0 : i32
    return %c0_i32, %c0_i32_0 : i32, i32
  }
  func.func @transform_5(%arg0: i32) -> (i32, i32) {
    %c0_i32 = arith.constant 0 : i32
    %c0_i32_0 = arith.constant 0 : i32
    %c0_i32_1 = arith.constant 0 : i32
    return %c0_i32, %c0_i32_0 : i32, i32
  }
  func.func @transform_6(%arg0: i32) -> (i32, i32) {
    %c0_i32 = arith.constant 0 : i32
    %c0_i32_0 = arith.constant 0 : i32
    %c0_i32_1 = arith.constant 0 : i32
    return %c0_i32, %c0_i32_0 : i32, i32
  }
  func.func @transform_7(%arg0: i32) -> (i32, i32) {
    %c0_i32 = arith.constant 0 : i32
    %c0_i32_0 = arith.constant 0 : i32
    %c0_i32_1 = arith.constant 0 : i32
    return %c0_i32, %c0_i32_0 : i32, i32
  }
  func.func @transform_8(%arg0: i32) -> (i32, i32) {
    %c0_i32 = arith.constant 0 : i32
    %c0_i32_0 = arith.constant 0 : i32
    %c0_i32_1 = arith.constant 0 : i32
    return %c0_i32, %c0_i32_0 : i32, i32
  }
  func.func @transform_9(%arg0: i32) -> (i32, i32) {
    %c0_i32 = arith.constant 0 : i32
    %c0_i32_0 = arith.constant 0 : i32
    return %arg0, %c0_i32 : i32, i32
  }
}

</mosaic_0001>

<bundles_post_ra>
// kernel: tpu_custom_call.1
= control target key start
LH: loop header
LB: loop body
LE: loop exit
PB: predicated region body
PF: predicated region fallthrough
CT: control target
= control target key end

     0   :  { %v728_v1 = vmov 0   ;;  %s899_s0 = inlined_call_operand.vmem [shape: f32[8,16], index: 0, kind: input, shape index: {}]   ;;  %s900_s1 = inlined_call_operand.vmem [shape: f32[8,1], index: 1, kind: input, shape index: {}]   ;;  %s901_s2 = inlined_call_operand.vmem [shape: f32[1,16], index: 2, kind: input, shape index: {}]   ;;  %s902_s3 = inlined_call_operand.vmem [shape: f32[16,64], index: 3, kind: input, shape index: {}]   ;;  %s903_s4 = inlined_call_operand.vmem [shape: f32[16,64], index: 4, kind: input, shape index: {}]   ;;  %s904_s5 = inlined_call_operand.vmem [shape: f32[16,64], index: 5, kind: input, shape index: {}]   ;;  %s905_s6 = inlined_call_operand.vmem [shape: f32[1,64], index: 6, kind: input, shape index: {}]   ;;  %s906_s7 = inlined_call_operand.vmem [shape: f32[64,16], index: 7, kind: input, shape index: {}]   ;;  %s907_s8 = inlined_call_operand.vmem [shape: f32[1,16], index: 8, kind: input, shape index: {}]   ;;  %s908_s9 = inlined_call_operand.hbm [shape: f32[8,16], index: 9, kind: output, shape index: {}]  }
   0x1   :  { %v34_v0 = vld [vmem:[%s900_s1] sm:$0xff]  ;;  %697 = vset.pattern.permute.xlu0 %v728_v1 }
   0x2   :  { %38 = vperm.xlu0 %697, %v34_v0  }
   0x3   :  { %14 = vsyncpa [#allocation3], 0  ;;  %v258_v2 = vld [vmem:[%s903_s4 + $0x8] sm:$0xff]  ;;  %v729_v3 = vmov 0.0   ;;  %v257_v4 = vld [vmem:[%s903_s4] sm:$0xff]  ;;  %vm730_vm0 = vmmov 0  }
   0x4   :  { %643 = vmatprep.subr.mxu0 %v729_v3  ;;  %647 = vmatprep.mubr.msk.f32.mxu0 %vm730_vm0, %v729_v3  ;;  %v610_v5 = vld [vmem:[%s901_s2] ss:$0 sm:$0xff]  ;;  %v731_v18 = vmov 683565275   ;;  %v732_v20 = vmov 2475754826  }
   0x5   :  { %644 = vmatpush3.msra.mxu0 %v258_v2  ;;  %664 = vmatprep.subr.mxu1 %v729_v3  ;;  %v733_v23 = vmov 2131351028   ;;  %v734_v26 = vmov 2102212464   ;;  %v735_v29 = vmov 920167782  }
   0x6   :  { %645 = vmatprep.subr.mxu0 %v729_v3  ;;  %680 = vmatprep.mubr.msk.f32.mxu1 %vm730_vm0, %v729_v3  ;;  %v736_v32 = vmov 1326507024   ;;  %vm259_vm13 = vcmask 130048  }
   0x7   :  { %646 = vmatpush3.msra.mxu0 %v257_v4 }
   0x8   :  { %650 = vmatprep.subr.mxu0 %v729_v3 }
  0x7d   :  { %v39_v6 = vpop.permute.xlu0 %38 }
  0x7e   :  { %v808_v7 = vmul.f32 %v610_v5, %v39_v6 }
  0x80   :  { %v51_v8 = vand.u32 2139095040, %v808_v7  ;;  %v48_v12 = vand.u32 2147483647, %v808_v7  ;;  %vm50_vm8 = vcmp.lt.s32.totalorder %v808_v7, 0  ;;  %vm140_vm14 = vweird.f32 %v808_v7 }
  0x82   :  { %v52_v9 = vshrl.u32 %v51_v8, 23  ;;  %v55_v15 = vand.u32 8388607, %v48_v12  ;;  %vm49_vm9 = vcmp.le.f32.partialorder %v48_v12, 0.7853982 }
  0x84   :  { %v611_v10 = vadd.s32 4294967169, %v52_v9  ;;  %v56_v34 = vor.u32 8388608, %v55_v15 }
  0x86   :  { %v58_v11 = vadd.s32 1, %v611_v10  ;;  %v96_v48 = vshll.u32 %v56_v34, 8 }
  0x88   :  { %vm59_vm1 = vcmp.gt.s32.totalorder %v58_v11, 0 }
  0x89   :  { %v60_v13 = vsel %vm59_vm1, %v58_v11, 0 }
  0x8a   :  { %v62_v14 = vand.u32 31, %v60_v13  ;;  %v61_v17 = vshrl.u32 %v60_v13, 5 }
  0x8c   :  { %v63_v16 = vsub.s32 32, %v62_v14  ;;  %v65_v19 = vshll.u32 %v731_v18, %v62_v14  ;;  %v68_v21 = vshll.u32 %v732_v20, %v62_v14  ;;  %v71_v25 = vshll.u32 %v733_v23, %v62_v14 }
  0x8d   :  { %v74_v28 = vshll.u32 %v734_v26, %v62_v14  ;;  %v77_v31 = vshll.u32 %v735_v29, %v62_v14  ;;  %vm80_vm2 = vcmp.lt.s32.totalorder %v61_v17, 1  ;;  %vm83_vm3 = vcmp.lt.s32.totalorder %v61_v17, 4 }
  0x8e   :  { %v66_v22 = vshrl.u32 %v732_v20, %v63_v16  ;;  %v69_v24 = vshrl.u32 %v733_v23, %v63_v16  ;;  %v72_v27 = vshrl.u32 %v734_v26, %v63_v16  ;;  %v75_v30 = vshrl.u32 %v735_v29, %v63_v16 }
  0x8f   :  { %v78_v33 = vshrl.u32 %v736_v32, %v63_v16  ;;  %v64_v43 = vshrl.u32 %v731_v18, %v63_v16  ;;  %vm82_vm4 = vcmp.lt.s32.totalorder %v61_v17, 3  ;;  %vm81_vm5 = vcmp.lt.s32.totalorder %v61_v17, 2 }
  0x90   :  { %v67_v35 = vor.u32 %v66_v22, %v65_v19  ;;  %v70_v36 = vor.u32 %v69_v24, %v68_v21  ;;  %v73_v37 = vor.u32 %v72_v27, %v71_v25  ;;  %v76_v38 = vor.u32 %v75_v30, %v74_v28 }
  0x91   :  { %v79_v39 = vor.u32 %v78_v33, %v77_v31 }
  0x92   :  { %v85_v40 = vsel %vm83_vm3, %v73_v37, 2102212464  ;;  %v88_v41 = vsel %vm80_vm2, %v67_v35, %v70_v36  ;;  %v92_v42 = vsel %vm80_vm2, %v70_v36, %v73_v37  ;;  %v89_v44 = vsel %vm83_vm3, %v76_v38, 920167782 }
  0x93   :  { %v93_v45 = vsel %vm83_vm3, %v79_v39, 1326507024  ;;  %v90_v46 = vsel %vm82_vm4, %v73_v37, %v89_v44  ;;  %v84_v49 = vsel %vm80_vm2, %v64_v43, %v67_v35  ;;  %v86_v50 = vsel %vm82_vm4, %v70_v36, %v85_v40  ;;  %v256_v37 = vld [vmem:[%s902_s3 + $0x8] sm:$0xff]  ;;  %v255_v39 = vld [vmem:[%s902_s3] sm:$0xff] }
  0x94   :  { %v94_v47 = vsel %vm82_vm4, %v76_v38, %v93_v45  ;;  %v91_v51 = vsel %vm81_vm5, %v88_v41, %v90_v46  ;;  %v87_v57 = vsel %vm81_vm5, %v84_v49, %v86_v50  ;;  %v407_v43 = vld [vmem:[%s904_s5 + $0x8] sm:$0xff]  ;;  %v406_v45 = vld [vmem:[%s904_s5] sm:$0xff]  ;;  %v494_v50 = vld [vmem:[%s906_s7 + $0x18] sm:$0xff] }
  0x95   :  { %v95_v52 = vsel %vm81_vm5, %v92_v42, %v94_v47  ;;  %v817_v55 = vmul.u32.u64.low %v96_v48, %v91_v51  ;;  %v818_v56 = vmul.u32.u64.high %v96_v48, %v91_v51, %v817_v55  ;;  %v103_v59 = vmul.u32 %v96_v48, %v87_v57  ;;  %v33_v42 = vld [vmem:[%s899_s0] sm:$0xff]  ;;  %v498_v47 = vld [vmem:[%s906_s7 + $0x38] sm:$0xff]  ;;  %v493_v51 = vld [vmem:[%s906_s7 + $0x10] sm:$0xff] }
  0x96   :  { %v814_v53 = vmul.u32.u64.low %v96_v48, %v95_v52  ;;  %v815_v54 = vmul.u32.u64.high %v96_v48, %v95_v52, %v814_v53  ;;  %665 = vmatpush3.msra.mxu1 %v498_v47  ;;  %v497_v48 = vld [vmem:[%s906_s7 + $0x30] sm:$0xff]  ;;  %v495_v49 = vld [vmem:[%s906_s7 + $0x20] sm:$0xff]  ;;  %v492_v52 = vld [vmem:[%s906_s7 + $0x8] sm:$0xff] }
  0x97   :  { %v106_v58 = vadd.s32 1, %v818_v56  ;;  %666 = vmatprep.subr.mxu1 %v729_v3  ;;  %v491_v53 = vld [vmem:[%s906_s7] sm:$0xff] }
  0x98   :  { %vm105_vm6 = vc.u32 %v815_v54, %v817_v55  ;;  %v104_v9 = vadd.s32 %v817_v55, %v815_v54  ;;  %667 = vmatpush3.msra.mxu1 %v497_v48 }
  0x99   :  { %v107_v60 = vsel %vm105_vm6, %v106_v58, %v818_v56  ;;  %668 = vmatprep.subr.mxu1 %v729_v3 }
  0x9a   :  { %v108_v61 = vadd.s32 %v107_v60, %v103_v59  ;;  %v622_v60 = vld [vmem:[%s905_s6] ss:$0 sm:$0xff]  ;;  %s737_s6 = smov [#allocation2]  }
  0x9b   :  { %s602_s16 = sshll.u32 %s737_s6, 4  ;;  %s603_s16 = int_to_ptr.vmem [resolvable:$true] %s602_s16 }
  0x9c   :  { %v109_v62 = vadd.s32 536870912, %v108_v61  ;;  %p711_p1 = scmp.lt.s32.totalorder %s603_s16, %s603_s16 }
  0x9e   :  { %v110_v63 = vshrl.u32 %v109_v62, 30 }
  0xa0   :  { %v111_v0 = vshll.u32 %v110_v63, 30  ;;  %v134_v23 = vsub.s32 4, %v110_v63 }
  0xa2   :  { %v112_v1 = vsub.s32 %v108_v61, %v111_v0  ;;  %v135_v26 = vsel %vm50_vm8, %v134_v23, %v110_v63 }
  0xa3   :  { %v137_v27 = vsel %vm49_vm9, 0, %v135_v26 }
  0xa4   :  { %v114_v2 = vsub.s32 0, %v112_v1  ;;  %v141_v28 = vadd.s32 3, %v137_v27  ;;  %v245_v35 = vand.u32 3, %v137_v27 }
  0xa6   :  { %v612_v4 = vmin.u32 %v114_v2, %v112_v1  ;;  %v142_v29 = vand.u32 3, %v141_v28  ;;  %vm247_vm15 = vcmp.eq.s32.totalorder %v245_v35, 0  ;;  %vm250_vm1 = vcmp.eq.s32.totalorder %v245_v35, 2 }
  0xa7   :  { %vm246_vm2 = vcmp.lt.s32.totalorder %v245_v35, 2 }
  0xa8   :  { %v116_v5 = vclz %v612_v4  ;;  %vm147_vm10 = vcmp.eq.s32.totalorder %v142_v29, 2  ;;  %vm144_vm11 = vcmp.eq.s32.totalorder %v142_v29, 0  ;;  %vm143_vm12 = vcmp.lt.s32.totalorder %v142_v29, 2 }
  0xaa   :  { %v613_v6 = vadd.s32 4294967294, %v116_v5 }
  0xac   :  { %vm614_vm7 = vcmp.lt.s32.totalorder %v613_v6, 0 }
  0xad   :  { %v119_v8 = vsel %vm614_vm7, 0, %v613_v6 }
  0xae   :  { %v120_v10 = vsub.s32 32, %v119_v8  ;;  %v124_v11 = vsub.s32 4294967266, %v119_v8  ;;  %v121_v13 = vshll.u32 %v112_v1, %v119_v8 }
  0xb0   :  { %v122_v14 = vshrl.u32 %v104_v9, %v120_v10  ;;  %v125_v15 = vadd.s32 127, %v124_v11 }
  0xb2   :  { %v123_v16 = vor.u32 %v122_v14, %v121_v13  ;;  %v126_v17 = vshll.u32 %v125_v15, 23 }
  0xb4   :  { %v127_v18 = vor.u32 4788187, %v126_v17  ;;  %v130_v20 = vcvt.s32.f32 %v123_v16 }
  0xb6   :  { %v128_v19 = vand.u32 2147483647, %v127_v18 }
  0xb8   :  { %v131_v21 = vmul.f32 %v130_v20, %v128_v19 }
  0xba   :  { %v132_v22 = vxor.u32 2147483648, %v131_v21 }
  0xbc   :  { %v133_v24 = vsel %vm50_vm8, %v132_v22, %v131_v21 }
  0xbd   :  { %v136_v25 = vsel %vm49_vm9, %v808_v7, %v133_v24  ;;  %v496_v7 = vld [vmem:[%s906_s7 + $0x28] sm:$0xff] }
  0xbe   :  { %698 = vcosq.f32 %v136_v25  ;;  %669 = vmatpush3.msra.mxu1 %v496_v7 }
  0xbf   :  { %700 = vsinq.f32 %v136_v25  ;;  %670 = vmatprep.subr.mxu1 %v729_v3 }
  0xc0   :  { %671 = vmatpush3.msra.mxu1 %v495_v49 }
  0xc1   :  { %672 = vmatprep.subr.mxu1 %v729_v3 }
  0xc2   :  { %673 = vmatpush3.msra.mxu1 %v494_v50 }
  0xc3   :  { %674 = vmatprep.subr.mxu1 %v729_v3 }
  0xc4   :  { %675 = vmatpush3.msra.mxu1 %v493_v51 }
  0xc5   :  { %676 = vmatprep.subr.mxu1 %v729_v3 }
  0xc6   :  { %677 = vmatpush3.msra.mxu1 %v492_v52 }
  0xc7   :  { %678 = vmatprep.subr.mxu1 %v729_v3 }
  0xc8   :  { %679 = vmatpush3.msra.mxu1 %v491_v53 }
  0xcb   :  { %v699_v30 = vpop.eup %698 }
  0xcc   :  { %v701_v31 = vpop.eup %700  ;;  %v148_v32 = vxor.u32 2147483648, %v699_v30 }
  0xcd   :  { %v145_v33 = vxor.u32 2147483648, %v701_v31 }
  0xce   :  { %v149_v34 = vsel %vm147_vm10, %v148_v32, %v701_v31  ;;  %v252_v41 = vsel %vm250_vm1, %v148_v32, %v701_v31 }
  0xcf   :  { %v146_v36 = vsel %vm144_vm11, %v699_v30, %v145_v33  ;;  %v249_v40 = vsel %vm247_vm15, %v699_v30, %v145_v33 }
  0xd0   :  { %v150_v12 = vsel %vm143_vm12, %v146_v36, %v149_v34  ;;  %v253_v44 = vsel %vm246_vm2, %v249_v40, %v252_v41 }
  0xd1   :  { %v151_v38 = vsel %vm140_vm14, nan, %v150_v12  ;;  %v254_v46 = vsel %vm140_vm14, nan, %v253_v44 }
  0xd2   :  { %648 = vmatmul.mubr.msk.f32.vlgmr.msra.gmra.mxu0 %vm259_vm13, %v151_v38 }
  0xd3   :  { %651 = vmatpush3.msra.mxu0 %v256_v37  ;;  %654 = vmatprep.mubr.msk.f32.mxu0 %vm730_vm0, %v729_v3 }
  0xd4   :  { %652 = vmatprep.subr.mxu0 %v729_v3 }
  0xd5   :  { %653 = vmatpush3.msra.mxu0 %v255_v39 }
  0xd6   :  { %657 = vmatprep.subr.mxu0 %v729_v3  ;;  %655 = vmatmul.mubr.msk.f32.vlgmr.msra.gmra.mxu0 %vm259_vm13, %v33_v42 }
  0xd7   :  { %658 = vmatpush3.msra.mxu0 %v407_v43  ;;  %661 = vmatprep.mubr.msk.f32.mxu0 %vm730_vm0, %v729_v3  ;;  %vm506_vm0 = vcmask 523264  }
  0xd8   :  { %659 = vmatprep.subr.mxu0 %v729_v3  ;;  %v623_v3 = vld [vmem:[%s907_s8] ss:$0 sm:$0xff]  ;;  %s706_s8 = scalar_lea.vmem %s603_s16, 128 }
  0xd9   :  { %660 = vmatpush3.msra.mxu0 %v406_v45  ;;  %p707_p0 = scmp.ne.s32.totalorder %s603_s16, %s706_s8  ;;  %p712_p2 = scmp.lt.s32.totalorder %s706_s8, %s706_s8 }
  0xda   :  { %662 = vmatmul.mubr.msk.f32.vlgmr.msra.gmra.mxu0 %vm259_vm13, %v254_v46 }
  0xdb   :  { %p713_p3 = por %p712_p2, %p711_p1 }
  0xdd   :  { %p714_p4 = pnand %p713_p3, %p707_p0 }
 0x192   :  { %v329_v54 = vpop.f32.mrf.mxu0 }
 0x194   :  { %v649_v55 = vpop.f32.mrf.mxu0 }
 0x196   :  { %v402_v56 = vpop.f32.mrf.mxu0 }
 0x197   :  { %v403_v58 = vadd.f32 %v402_v56, %v329_v54 }
 0x198   :  { %v656_v57 = vpop.f32.mrf.mxu0 }
 0x19a   :  { %v477_v59 = vpop.f32.mrf.mxu0 }
 0x19b   :  { %v481_v61 = vadd.f32 %v477_v59, %v403_v58 }
 0x19c   :  { %v663_v62 = vpop.f32.mrf.mxu0 }
 0x19d   :  { %v489_v63 = vadd.f32 %v622_v60, %v481_v61 }
 0x19f   :  { %v490_v0 = vmax.f32 %v489_v63, 0.0 }
 0x1a1   :  { %681 = vmatmul.mubr.msk.f32.vlgmr.msra.gmra.mxu1 %vm506_vm0, %v490_v0 }
 0x261   :  { %v576_v1 = vpop.f32.mrf.mxu1 }
 0x262   :  { %v577_v2 = vadd.f32 %v623_v3, %v576_v1 }
 0x263   :  { %v682_v4 = vpop.f32.mrf.mxu1 }
 0x264   :  { %v580_v5 = vand.u32 2147483647, %v577_v2  ;;  %v593_v18 = vmax.f32 %v577_v2, 0.0 }
 0x266   :  { %v581_v6 = vsub.f32 0.0, %v580_v5 }
 0x268   :  { %v582_v8 = vmul.f32 1.442695, %v581_v6 }
 0x26a   :  { %702 = vpow2.f32 %v582_v8 }
 0x277   :  { %v703_v9 = vpop.eup %702 }
 0x278   :  { %v584_v10 = vadd.f32 1.0, %v703_v9  ;;  %v587_v11 = vmul.f32 -0.5, %v703_v9  ;;  %v590_v14 = vand.u32 2147483647, %v703_v9 }
 0x27a   :  { %704 = vlog2.f32 %v584_v10  ;;  %v588_v13 = vadd.f32 1.0, %v587_v11  ;;  %vm591_vm3 = vcmp.lt.f32.partialorder %v590_v14, 0.0004427343 }
 0x27c   :  { %v589_v17 = vmul.f32 %v703_v9, %v588_v13 }
 0x287   :  { %v705_v15 = vpop.eup %704 }
 0x288   :  { %v586_v16 = vmul.f32 0.6931472, %v705_v15 }
 0x28a   :  { %v592_v19 = vsel %vm591_vm3, %v589_v17, %v586_v16 }
 0x28b   :  { %v594_v20 = vadd.f32 %v593_v18, %v592_v19 }
 0x28d   :  { %595 = vst.msk [vmem:[#allocation2] sm:$0xff] %vm259_vm13, %v594_v20 }
 0x28e   :  { %717 = shalt.err (!%p714_p4)
}
 0x28f   :  { %605 = dma.vmem_to_hbm [thread:$0]  %s603_s16, 128, %s908_s9, [#allocation3]  }
 0x290   :  { %726 = dma.done.wait [#allocation3], 128  }
 0x291   :  { %727 = vsyncadd [#allocation3], 4294967168 }
 0x292   :  { %609 = vsyncpa [#allocation3], 1 }

</bundles_post_ra>
